<compile_context>
chip_gen: v7x
topology: tpu7x:2x2x1
jax: 0.10.0
libtpu: 0.0.40
codegen_flags: <defaults>
</compile_context>

<pallas_src>
import jax
import jax.numpy as jnp
from jax import lax
from jax.experimental import pallas as pl
from jax.experimental.pallas import tpu as pltpu

IN_FEATURES = 117
HIDDEN = 20


def ef_mlp_kernel(x_ref, w1_ref, b1_ref, w2d_ref, b2d_ref, o_ref):
    # Layer 1 on the MXU. x_ref is batch-major (tb, 117); contracting the feature dims
    # directly (w1 dim 1 with x dim 1) gives (HIDDEN, tb) with batch on the lane axis,
    # so no materialized transpose of x is needed in HBM or VMEM.
    h = lax.dot_general(
        w1_ref[...], x_ref[...],
        dimension_numbers=(((1,), (1,)), ((), ())),
        preferred_element_type=jnp.float32)
    h = jnp.maximum(h + b1_ref[...], 0.0)                          # bias + ReLU, lane-dense
    # Layer 2 (20->2) + log_softmax collapsed to the 2-class closed form:
    #   d = (w2[0]-w2[1]) . h + (b2[0]-b2[1]);  logp0 = d - softplus(d);  logp1 = -softplus(d)
    d = jnp.sum(h * w2d_ref[...], axis=0, keepdims=True) + b2d_ref[0]
    sp = jnp.maximum(d, 0.0) + jnp.log(1.0 + jnp.exp(-jnp.abs(d)))  # stable softplus(d)
    o_ref[...] = jnp.concatenate([d - sp, -sp], axis=0)             # single (2, tb) store


def prepare_params(w1, b1, w2, b2, x_dtype=jnp.float32):
    """One-time weight preparation (hoist out of the per-call path when weights are reused).
    PyTorch layout in: w1 (20,117), b1 (20,), w2 (2,20), b2 (2,)."""
    mm_dtype = jnp.bfloat16 if jnp.dtype(x_dtype) == jnp.bfloat16 else jnp.float32
    w1c = jnp.asarray(w1).astype(mm_dtype)                            # (20, 117), matches x for MXU
    b1c = jnp.asarray(b1).reshape(HIDDEN, 1).astype(jnp.float32)      # (20, 1)
    w2d = (jnp.asarray(w2)[0, :] - jnp.asarray(w2)[1, :]).reshape(HIDDEN, 1).astype(jnp.float32)
    b2d = jnp.reshape(jnp.asarray(b2)[0] - jnp.asarray(b2)[1], (1,)).astype(jnp.float32)
    return w1c, b1c, w2d, b2d


def _round_up(n, m):
    return ((n + m - 1) // m) * m


def _choose_tb(B, tb_max=8192):
    """Batch-tile size: large enough to amortize per-step overhead, >=2 (even when big)
    grid steps for v7x dual-TC balance, multiple of 128 for a lane-dense output block."""
    if B <= 128:
        return B                      # single exact block (block dims == full array dims)
    nb = pl.cdiv(B, tb_max)
    if nb < 2:
        nb = 2                        # always give both TensorCores work
    elif nb % 2:
        nb += 1                       # balanced split across 2 cores
    return min(_round_up(pl.cdiv(B, nb), 128), tb_max)


def ef_mlp_apply(x, prepared, *, tb_max=8192):
    """x: (B, 117) f32 or bf16 (batch-major, unpadded). Returns (B, 2) f32 log-probs."""
    w1c, b1c, w2d, b2d = prepared
    B = x.shape[0]
    tb = _choose_tb(B, tb_max)
    grid = (pl.cdiv(B, tb),)

    flops = 2 * B * IN_FEATURES * HIDDEN + 4 * B * HIDDEN
    bytes_accessed = (x.size * x.dtype.itemsize + 4 * 2 * B
                      + w1c.size * w1c.dtype.itemsize + 4 * (2 * HIDDEN + 1))

    out = pl.pallas_call(
        ef_mlp_kernel,
        out_shape=jax.ShapeDtypeStruct((2, B), jnp.float32),
        grid=grid,
        in_specs=[
            pl.BlockSpec((tb, IN_FEATURES), lambda i: (i, 0)),        # x tile (streams, batch-major)
            pl.BlockSpec((HIDDEN, IN_FEATURES), lambda i: (0, 0)),    # w1 (resident in VMEM)
            pl.BlockSpec((HIDDEN, 1), lambda i: (0, 0)),              # b1 column (resident)
            pl.BlockSpec((HIDDEN, 1), lambda i: (0, 0)),              # w2[0]-w2[1] column (resident)
            pl.BlockSpec(memory_space=pltpu.MemorySpace.SMEM),        # b2[0]-b2[1] scalar in SMEM
        ],
        out_specs=pl.BlockSpec((2, tb), lambda i: (0, i)),            # lane-dense output
        compiler_params=pltpu.CompilerParams(
            dimension_semantics=("parallel",),        # shards the batch loop across v7x's 2 TCs
            vmem_limit_bytes=32 * 1024 * 1024,        # safe on v5e/v6e/v7x
        ),
        cost_estimate=pl.CostEstimate(
            flops=flops, transcendentals=2 * B, bytes_accessed=bytes_accessed),
    )(x, w1c, b1c, w2d, b2d)

    return out.T                                                       # (B, 2)


def ef_mlp_forward(x, w1, b1, w2, b2, *, tb_max=8192):
    """Convenience wrapper: prepares weights per call (prefer prepare_params + ef_mlp_apply
    when weights are reused across calls)."""
    return ef_mlp_apply(x, prepare_params(w1, b1, w2, b2, x.dtype), tb_max=tb_max)


def init_params(key):
    """Deterministic init mimicking nn.Linear default: U(-1/sqrt(fan_in), 1/sqrt(fan_in))."""
    k1, k2, k3, k4 = jax.random.split(key, 4)
    lim1 = 1.0 / jnp.sqrt(117.0)
    lim2 = 1.0 / jnp.sqrt(20.0)
    w1 = jax.random.uniform(k1, (HIDDEN, IN_FEATURES), jnp.float32, -lim1, lim1)
    b1 = jax.random.uniform(k2, (HIDDEN,), jnp.float32, -lim1, lim1)
    w2 = jax.random.uniform(k3, (2, HIDDEN), jnp.float32, -lim2, lim2)
    b2 = jax.random.uniform(k4, (2,), jnp.float32, -lim2, lim2)
    return w1, b1, w2, b2


def reference_forward(x, w1, b1, w2, b2):
    h = jnp.maximum(x @ w1.T + b1, 0.0)
    z = h @ w2.T + b2
    return jax.nn.log_softmax(z, axis=1)


if __name__ == "__main__":
    key = jax.random.PRNGKey(0)
    kx, kp, kx2, kx3 = jax.random.split(key, 4)
    w1, b1, w2, b2 = init_params(kp)

    # Weight prep hoisted (done once, reused for both f32 calls).
    prepared_f32 = prepare_params(w1, b1, w2, b2, jnp.float32)

    # Small batch: single exact block.
    B = 8
    x = jax.random.normal(kx, (B, IN_FEATURES), jnp.float32)
    out = jax.block_until_ready(ef_mlp_apply(x, prepared_f32))
    ref = reference_forward(x, w1, b1, w2, b2)
    assert out.shape == (B, 2)
    assert jnp.allclose(out, ref, atol=1e-5, rtol=1e-5)

    # Larger batch: 2 balanced grid steps (dual-TC on v7x) with a partial last block.
    B2 = 2500
    x2 = jax.random.normal(kx2, (B2, IN_FEATURES), jnp.float32)
    out2 = jax.block_until_ready(ef_mlp_apply(x2, prepared_f32))
    ref2 = reference_forward(x2, w1, b1, w2, b2)
    assert out2.shape == (B2, 2)
    assert jnp.allclose(out2, ref2, atol=1e-5, rtol=1e-5)

    # bf16 x-streaming path (halves HBM bytes of the dominant operand); f32 accumulation.
    B3 = 512
    x3 = jax.random.normal(kx3, (B3, IN_FEATURES), jnp.float32).astype(jnp.bfloat16)
    prepared_bf16 = prepare_params(w1, b1, w2, b2, jnp.bfloat16)
    out3 = jax.block_until_ready(ef_mlp_apply(x3, prepared_bf16))
    ref3 = reference_forward(x3.astype(jnp.float32), w1, b1, w2, b2)
    assert out3.shape == (B3, 2)
    assert jnp.allclose(out3, ref3, atol=5e-2, rtol=0)

    print("KERNEL_OK")
</pallas_src>

<mosaic_0001>
module attributes {stable_mosaic.version = 11 : i64} {
  func.func @ef_mlp_kernel(%arg0: i32, %arg1: memref<8x117xf32, #tpu.memory_space<vmem>>, %arg2: memref<20x117xf32, #tpu.memory_space<vmem>>, %arg3: memref<20x1xf32, #tpu.memory_space<vmem>>, %arg4: memref<20x1xf32, #tpu.memory_space<vmem>>, %arg5: memref<1xf32, #tpu.memory_space<smem>>, %arg6: memref<2x8xf32, #tpu.memory_space<vmem>>) attributes {dimension_semantics = [#tpu.dimension_semantics<parallel>], iteration_bounds = array<i64: 1>, scalar_prefetch = 0 : i64, scratch_operands = 0 : i64, tpu.core_type = #tpu.core_type<tc>, window_params = [{transform_indices = @transform_0, window_bounds = array<i64: 8, 117>}, {pipeline_mode = #tpu.pipeline_mode<synchronous>, transform_indices = @transform_1, window_bounds = array<i64: 20, 117>}, {pipeline_mode = #tpu.pipeline_mode<synchronous>, transform_indices = @transform_2, window_bounds = array<i64: 20, 1>}, {pipeline_mode = #tpu.pipeline_mode<synchronous>, transform_indices = @transform_3, window_bounds = array<i64: 20, 1>}, {transform_indices = @transform_4, window_bounds = array<i64: 1>}, {transform_indices = @transform_5, window_bounds = array<i64: 2, 8>}]} {
    %c0 = arith.constant 0 : index
    %c0_0 = arith.constant 0 : index
    %0 = vector.load %arg2[%c0, %c0_0] : memref<20x117xf32, #tpu.memory_space<vmem>>, vector<20x117xf32>
    %c0_1 = arith.constant 0 : index
    %c0_2 = arith.constant 0 : index
    %1 = vector.load %arg1[%c0_1, %c0_2] : memref<8x117xf32, #tpu.memory_space<vmem>>, vector<8x117xf32>
    %cst = arith.constant dense<0.000000e+00> : vector<20x8xf32>
    %2 = tpu.matmul %0, %1, %cst {dimension_numbers = #tpu.dot_dimension_numbers<[1], [1], [0], [0], [0, 0, 1, 0], [], []>} : vector<20x117xf32>, vector<8x117xf32>, vector<20x8xf32> -> vector<20x8xf32>
    %c0_3 = arith.constant 0 : index
    %c0_4 = arith.constant 0 : index
    %3 = vector.load %arg3[%c0_3, %c0_4] : memref<20x1xf32, #tpu.memory_space<vmem>>, vector<20x1xf32>
    %4 = vector.broadcast %3 : vector<20x1xf32> to vector<20x8xf32>
    %5 = arith.addf %2, %4 : vector<20x8xf32>
    %cst_5 = arith.constant 0.000000e+00 : f32
    %6 = vector.broadcast %cst_5 : f32 to vector<20x8xf32>
    %7 = arith.maximumf %5, %6 : vector<20x8xf32>
    %c0_6 = arith.constant 0 : index
    %c0_7 = arith.constant 0 : index
    %8 = vector.load %arg4[%c0_6, %c0_7] : memref<20x1xf32, #tpu.memory_space<vmem>>, vector<20x1xf32>
    %9 = vector.broadcast %8 : vector<20x1xf32> to vector<20x8xf32>
    %10 = arith.mulf %7, %9 : vector<20x8xf32>
    %cst_8 = arith.constant dense<0.000000e+00> : vector<8xf32>
    %11 = vector.multi_reduction <add>, %10, %cst_8 [0] : vector<20x8xf32> to vector<8xf32>
    %12 = vector.shape_cast %11 : vector<8xf32> to vector<1x8xf32>
    %c0_9 = arith.constant 0 : index
    %13 = memref.load %arg5[%c0_9] : memref<1xf32, #tpu.memory_space<smem>>
    %14 = vector.broadcast %13 : f32 to vector<1x8xf32>
    %15 = arith.addf %12, %14 : vector<1x8xf32>
    %cst_10 = arith.constant 0.000000e+00 : f32
    %16 = vector.broadcast %cst_10 : f32 to vector<1x8xf32>
    %17 = arith.maximumf %15, %16 : vector<1x8xf32>
    %18 = math.absf %15 : vector<1x8xf32>
    %cst_11 = arith.constant 0.000000e+00 : f32
    %19 = vector.broadcast %cst_11 : f32 to vector<1x8xf32>
    %20 = arith.subf %19, %18 : vector<1x8xf32>
    %21 = math.exp %20 : vector<1x8xf32>
    %cst_12 = arith.constant 1.000000e+00 : f32
    %22 = vector.broadcast %cst_12 : f32 to vector<1x8xf32>
    %23 = arith.addf %22, %21 : vector<1x8xf32>
    %24 = math.log %23 : vector<1x8xf32>
    %25 = arith.addf %17, %24 : vector<1x8xf32>
    %26 = arith.subf %15, %25 : vector<1x8xf32>
    %cst_13 = arith.constant 0.000000e+00 : f32
    %27 = vector.broadcast %cst_13 : f32 to vector<1x8xf32>
    %28 = arith.subf %27, %25 : vector<1x8xf32>
    %29 = tpu.concatenate %26, %28 in 0 : vector<1x8xf32>, vector<1x8xf32> -> vector<2x8xf32>
    %c0_14 = arith.constant 0 : index
    %c0_15 = arith.constant 0 : index
    %30 = vector.load %arg6[%c0_14, %c0_15] : memref<2x8xf32, #tpu.memory_space<vmem>>, vector<2x8xf32>
    tpu.vector_store %arg6[%c0_14, %c0_15], %29 {strides = array<i32>} : memref<2x8xf32, #tpu.memory_space<vmem>>, vector<2x8xf32>,
    return
  }
  func.func @transform_0(%arg0: i32) -> (i32, i32) {
    %c0_i32 = arith.constant 0 : i32
    %c0_i32_0 = arith.constant 0 : i32
    return %arg0, %c0_i32 : i32, i32
  }
  func.func @transform_1(%arg0: i32) -> (i32, i32) {
    %c0_i32 = arith.constant 0 : i32
    %c0_i32_0 = arith.constant 0 : i32
    %c0_i32_1 = arith.constant 0 : i32
    return %c0_i32, %c0_i32_0 : i32, i32
  }
  func.func @transform_2(%arg0: i32) -> (i32, i32) {
    %c0_i32 = arith.constant 0 : i32
    %c0_i32_0 = arith.constant 0 : i32
    %c0_i32_1 = arith.constant 0 : i32
    return %c0_i32, %c0_i32_0 : i32, i32
  }
  func.func @transform_3(%arg0: i32) -> (i32, i32) {
    %c0_i32 = arith.constant 0 : i32
    %c0_i32_0 = arith.constant 0 : i32
    %c0_i32_1 = arith.constant 0 : i32
    return %c0_i32, %c0_i32_0 : i32, i32
  }
  func.func @transform_4(%arg0: i32) -> i32 {
    %c0_i32 = arith.constant 0 : i32
    %c0_i32_0 = arith.constant 0 : i32
    return %c0_i32 : i32
  }
  func.func @transform_5(%arg0: i32) -> (i32, i32) {
    %c0_i32 = arith.constant 0 : i32
    %c0_i32_0 = arith.constant 0 : i32
    return %c0_i32, %arg0 : i32, i32
  }
}

</mosaic_0001>

<bundles_post_ra>
// kernel: tpu_custom_call.1
= control target key start
LH: loop header
LB: loop body
LE: loop exit
PB: predicated region body
PF: predicated region fallthrough
CT: control target
= control target key end

     0   :  { %vm44_vm0 = vcmask 957440   ;;  %v261_v1 = vmov 0.0   ;;  %vm262_vm1 = vmmov 0   ;;  %s345_s0 = inlined_call_operand.vmem [shape: f32[8,117], index: 0, kind: input, shape index: {}]   ;;  %s346_s1 = inlined_call_operand.vmem [shape: f32[20,117], index: 1, kind: input, shape index: {}]   ;;  %s347_s2 = inlined_call_operand.vmem [shape: f32[20,1], index: 2, kind: input, shape index: {}]   ;;  %s348_s3 = inlined_call_operand.vmem [shape: f32[20,1], index: 3, kind: input, shape index: {}]   ;;  %s349_s4 = inlined_call_operand.<no memory space> [shape: f32[1], index: 4, kind: input, shape index: {}]   ;;  %s350_s5 = inlined_call_operand.hbm [shape: f32[2,8], index: 5, kind: output, shape index: {}]  }
   0x1   :  { %v25_v0 = vld [vmem:[%s345_s0] sm:$0xff]  ;;  %214 = vmatprep.subr.mxu0 %v261_v1  ;;  %225 = vmatprep.subr.mxu1 %v261_v1  ;;  %v23_v3 = vld [vmem:[%s346_s1 + $0x8] sm:$0xff] }
   0x2   :  { %215 = vmatpush3.xpose.msk.msra.mxu0 %vm44_vm0, %v25_v0  ;;  %226 = vmatpush3.xpose.msk.msra.mxu1 %vm44_vm0, %v25_v0  ;;  %v22_v2 = vld [vmem:[%s346_s1] sm:$0xff] }
   0x3   :  { %216 = vmatprep.mubr.msk.f32.mxu0 %vm262_vm1, %v261_v1  ;;  %219 = vmatprep.mubr.msk.f32.mxu1 %vm262_vm1, %v261_v1  ;;  %v26_v4 = vld [vmem:[%s347_s2] sm:$0xff] }
   0x4   :  { %11 = vsyncpa [#allocation4], 0  ;;  %v263_v5 = vmov 0   ;;  %v28_v6 = vld [vmem:[%s347_s2 + $0x10] sm:$0xf]  ;;  %v27_v8 = vld [vmem:[%s347_s2 + $0x8] sm:$0xff]  ;;  %v175_v43 = vstv %s349_s4 }
   0x5   :  { %231 = vset.pattern.permute.xlu0 %v263_v5  ;;  %232 = vset.pattern.permute.xlu1 %v263_v5  ;;  %v24_v7 = vld [vmem:[%s346_s1 + $0x10] sm:$0xf]  ;;  %v140_v9 = vld [vmem:[%s348_s3] sm:$0xff]  ;;  %v141_v10 = vld [vmem:[%s348_s3 + $0x8] sm:$0xff]  ;;  %vm161_vm2 = vcmask 64512   ;;  %vm165_vm3 = vcmask 60416  }
   0x6   :  { %217 = vmatmul.mubr.msk.f32.vlgmr.msra.gmra.mrb[0].mxu0 %vm44_vm0, %v22_v2  ;;  %220 = vmatmul.mubr.msk.f32.vlgmr.msra.gmra.mrb[0].mxu1 %vm44_vm0, %v23_v3  ;;  %v142_v11 = vld [vmem:[%s348_s3 + $0x10] sm:$0xf]  ;;  %s264_s11 = smov [#allocation3]   ;;  %vm188_vm4 = vcmask 1040384   ;;  %vm190_vm5 = vcmask 58368  }
   0x7   :  { %222 = vmatprep.mubr.msk.f32.mxu1 %vm262_vm1, %v261_v1  ;;  %31 = vperm.xlu0 %231, %v26_v4   ;;  %s198_s12 = sshll.u32 %s264_s11, 4  ;;  %s199_s12 = int_to_ptr.vmem [resolvable:$true] %s198_s12 }
   0x8   :  { %41 = vperm.xlu1 %232, %v28_v6   ;;  %s237_s4 = scalar_lea.vmem %s199_s12, 32  ;;  %p242_p1 = scmp.lt.s32.totalorder %s199_s12, %s199_s12 }
   0x9   :  { %p238_p0 = scmp.ne.s32.totalorder %s199_s12, %s237_s4  ;;  %p243_p2 = scmp.lt.s32.totalorder %s237_s4, %s237_s4 }
   0xa   :  { %223 = vmatmul.mubr.msk.f32.gmra.mrb[2].mxu1 %vm44_vm0, %v24_v7 }
   0xb   :  { %36 = vperm.xlu0 %231, %v27_v8   ;;  %p244_p3 = por %p243_p2, %p242_p1 }
   0xc   :  { %145 = vperm.xlu1 %232, %v140_v9  }
   0xd   :  { %p245_p4 = pnand %p244_p3, %p238_p0 }
   0xf   :  { %150 = vperm.xlu0 %231, %v141_v10  }
  0x10   :  { %155 = vperm.xlu1 %232, %v142_v11  }
  0x86   :  { %v32_v12 = vpop.permute.xlu0 %31 }
  0x87   :  { %v42_v13 = vpop.permute.xlu1 %41 }
  0x8a   :  { %v37_v14 = vpop.permute.xlu0 %36 }
  0x8b   :  { %v146_v21 = vpop.permute.xlu1 %145 }
  0x8e   :  { %v151_v24 = vpop.permute.xlu0 %150 }
  0x8f   :  { %v156_v33 = vpop.permute.xlu1 %155 }
  0xd9   :  { %v123_v15 = vpop.f32.mrb[0].mxu0  ;;  %v128_v16 = vpop.f32.mrb[0].mxu1 }
  0xda   :  { %v124_v17 = vadd.f32 %v123_v15, %v32_v12  ;;  %v129_v18 = vadd.f32 %v128_v16, %v37_v14  ;;  %v221_v19 = vpop.f32.mrb[1].mxu1  ;;  %v218_v20 = vpop.f32.mrb[1].mxu0 }
  0xdc   :  { %v137_v22 = vmax.f32 %v124_v17, 0.0  ;;  %v138_v23 = vmax.f32 %v129_v18, 0.0 }
  0xdd   :  { %v133_v25 = vpop.f32.mrb[2].mxu1 }
  0xde   :  { %v158_v26 = vmul.f32 %v146_v21, %v137_v22  ;;  %v159_v27 = vmul.f32 %v151_v24, %v138_v23  ;;  %v134_v28 = vadd.f32 %v133_v25, %v42_v13  ;;  %v224_v29 = vpop.f32.mrb[3].mxu1 }
  0xe0   :  { %v162_v30 = vsel %vm161_vm2, %v158_v26, 0.0  ;;  %v163_v31 = vsel %vm161_vm2, %v159_v27, 0.0  ;;  %v139_v32 = vmax.f32 %v134_v28, 0.0 }
  0xe1   :  { %v164_v34 = vadd.f32 %v163_v31, %v162_v30 }
  0xe2   :  { %v160_v35 = vmul.f32 %v156_v33, %v139_v32 }
  0xe4   :  { %v166_v36 = vsel %vm165_vm3, %v160_v35, 0.0 }
  0xe5   :  { %v167_v37 = vadd.f32 %v166_v36, %v164_v34 }
  0xe7   :  { %v168_v38 = vrot.slane %v167_v37, 4 }
  0xe9   :  { %v169_v39 = vadd.f32 %v168_v38, %v167_v37 }
  0xeb   :  { %v170_v40 = vrot.slane %v169_v39, 2 }
  0xed   :  { %v171_v41 = vadd.f32 %v170_v40, %v169_v39 }
  0xef   :  { %v172_v42 = vrot.slane %v171_v41, 1 }
  0xf1   :  { %v173_v44 = vadd.f32 %v172_v42, %v171_v41 }
  0xf3   :  { %v176_v45 = vadd.f32 %v175_v43, %v173_v44 }
  0xf5   :  { %v178_v46 = vand.u32 2147483647, %v176_v45  ;;  %v177_v52 = vmax.f32 %v176_v45, 0.0 }
  0xf7   :  { %v179_v47 = vsub.f32 0.0, %v178_v46 }
  0xf9   :  { %v180_v48 = vmul.f32 1.442695, %v179_v47 }
  0xfb   :  { %233 = vpow2.f32 %v180_v48 }
 0x105   :  { %v234_v49 = vpop.eup %233 }
 0x106   :  { %v182_v50 = vadd.f32 1.0, %v234_v49 }
 0x108   :  { %235 = vlog2.f32 %v182_v50 }
 0x112   :  { %v236_v51 = vpop.eup %235 }
 0x113   :  { %v184_v53 = vmul.f32 0.6931472, %v236_v51 }
 0x115   :  { %v185_v54 = vadd.f32 %v184_v53, %v177_v52 }
 0x117   :  { %v186_v55 = vsub.f32 %v176_v45, %v185_v54  ;;  %v187_v56 = vsub.f32 0.0, %v185_v54 }
 0x119   :  { %v189_v57 = vsel %vm188_vm4, %v186_v55, %v187_v56 }
 0x11a   :  { %191 = vst.msk [vmem:[#allocation3] sm:$0x3] %vm190_vm5, %v189_v57 }
 0x11b   :  { %248 = shalt.err (!%p245_p4)
}
 0x11c   :  { %s249_s15 = scalar_lea.hbm %s350_s5, 32 }
 0x11d   :  { %p250_p5 = scmp.ne.s32.totalorder %s350_s5, %s249_s15  ;;  %p253_p6 = scmp.lt.u32.totalorder %s249_s15, %s350_s5 }
 0x11f   :  { %p255_p7 = pnand %p253_p6, %p250_p5 }
 0x121   :  { %258 = shalt.err (!%p255_p7)
}
 0x122   :  { %201 = dma.vmem_to_hbm [thread:$0]  %s199_s12, 32, %s350_s5, [#allocation4]  }
 0x123   :  { %259 = dma.done.wait [#allocation4], 32  }
 0x124   :  { %260 = vsyncadd [#allocation4], 4294967264 }
 0x125   :  { %205 = vsyncpa [#allocation4], 1 }

</bundles_post_ra>
